<compile_context>
chip_gen: v7x
topology: tpu7x:2x2x1
jax: 0.10.0
libtpu: 0.0.40
codegen_flags: <defaults>
</compile_context>

<pallas_src>
import functools
import math

import jax
import jax.numpy as jnp
from jax.experimental import pallas as pl
from jax.experimental.pallas import tpu as pltpu


LANE = 128
VMEM_BUDGET = 32 * 1024 * 1024


# ----------------------------------------------------------------------------
# Tiling helpers
# ----------------------------------------------------------------------------
def _round_up(a, b):
    return (a + b - 1) // b * b


def _choose_tm(m):
    # Cap at 256/512 so big-M layers expose multiple "parallel" i-blocks
    # (v7x has 2 TensorCores) while small layers use a single tight block.
    if m <= 256:
        return _round_up(m, 16)
    if m <= 2048:
        return 256
    return 512


def _choose_tn(np_):
    # np_ is always a multiple of 128.  Wider output tiles -> fewer grid
    # steps and lane-denser stores; fall back to 128 if 256 doesn't divide.
    if np_ >= 256 and np_ % 256 == 0:
        return 256
    return 128


def _k_tiling(k_dim):
    # Full-K single block whenever it fits comfortably in VMEM, otherwise the
    # smallest number of <=4096-wide K tiles (minimises zero padding).
    kp = _round_up(k_dim, LANE)
    if kp <= 4096:
        return kp, kp
    ntiles = -(-kp // 2048)
    tk = _round_up(-(-kp // ntiles), LANE)
    return tk * ntiles, tk


# ----------------------------------------------------------------------------
# Pallas kernels
# ----------------------------------------------------------------------------
def _epilogue(y, s, b, act):
    y = y * s + b
    if act == "relu":
        y = jnp.maximum(y, 0.0)
    elif act == "lrelu":                          # nn.LeakyReLU default slope
        y = jnp.where(y >= 0.0, y, 0.01 * y)
    elif act == "sigmoid":
        y = jax.nn.sigmoid(y)
    # 'linear' -> no-op
    return y


def _mm_kernel_singlek(x_ref, w_ref, s_ref, b_ref, o_ref, *, act):
    """Whole contraction in one block: dot -> BN -> act -> store (no scratch)."""
    y = jnp.dot(x_ref[...], w_ref[...], preferred_element_type=jnp.float32)
    o_ref[...] = _epilogue(y, s_ref[...], b_ref[...], act).astype(o_ref.dtype)


def _mm_kernel_multik(x_ref, w_ref, s_ref, b_ref, o_ref, acc_ref, *, act):
    """(X_bf16 @ W_bf16) into f32 acc; epilogue: *scale + bias -> activation."""
    @pl.when(pl.program_id(2) == 0)
    def _():
        acc_ref[...] = jnp.zeros_like(acc_ref)

    acc_ref[...] += jnp.dot(x_ref[...], w_ref[...],
                            preferred_element_type=jnp.float32)

    @pl.when(pl.program_id(2) == pl.num_programs(2) - 1)
    def _():
        y = _epilogue(acc_ref[...], s_ref[...], b_ref[...], act)
        o_ref[...] = y.astype(o_ref.dtype)


def matmul_fused(x, p, act, out_dtype=jnp.bfloat16):
    """x:[M,K] @ pre-padded bf16 weight [Kp,Np], fused BN + activation."""
    m, k = x.shape
    kp, np_ = p["w"].shape
    tk = p["tk"]
    n = p["n"]
    tm = _choose_tm(m)
    tn = _choose_tn(np_)
    mp = _round_up(m, tm)

    xb = x.astype(jnp.bfloat16)
    if mp != m or kp != k:
        xb = jnp.pad(xb, ((0, mp - m), (0, kp - k)))

    gm, gn, gk = mp // tm, np_ // tn, kp // tk

    if gk == 1:
        out = pl.pallas_call(
            functools.partial(_mm_kernel_singlek, act=act),
            out_shape=jax.ShapeDtypeStruct((mp, np_), out_dtype),
            grid_spec=pltpu.PrefetchScalarGridSpec(
                num_scalar_prefetch=0,
                grid=(gm, gn),
                in_specs=[
                    pl.BlockSpec((tm, kp), lambda i, j: (i, 0)),
                    pl.BlockSpec((kp, tn), lambda i, j: (0, j)),
                    pl.BlockSpec((1, tn), lambda i, j: (0, j)),
                    pl.BlockSpec((1, tn), lambda i, j: (0, j)),
                ],
                out_specs=pl.BlockSpec((tm, tn), lambda i, j: (i, j)),
            ),
            compiler_params=pltpu.CompilerParams(
                dimension_semantics=("parallel", "parallel"),
                vmem_limit_bytes=VMEM_BUDGET),
        )(xb, p["w"], p["scale"], p["bias"])
    else:
        out = pl.pallas_call(
            functools.partial(_mm_kernel_multik, act=act),
            out_shape=jax.ShapeDtypeStruct((mp, np_), out_dtype),
            grid_spec=pltpu.PrefetchScalarGridSpec(
                num_scalar_prefetch=0,
                grid=(gm, gn, gk),
                in_specs=[
                    pl.BlockSpec((tm, tk), lambda i, j, kk: (i, kk)),
                    pl.BlockSpec((tk, tn), lambda i, j, kk: (kk, j)),
                    pl.BlockSpec((1, tn), lambda i, j, kk: (0, j)),
                    pl.BlockSpec((1, tn), lambda i, j, kk: (0, j)),
                ],
                out_specs=pl.BlockSpec((tm, tn), lambda i, j, kk: (i, j)),
                scratch_shapes=[pltpu.VMEM((tm, tn), jnp.float32)],
            ),
            compiler_params=pltpu.CompilerParams(
                dimension_semantics=("parallel", "parallel", "arbitrary"),
                vmem_limit_bytes=VMEM_BUDGET),
        )(xb, p["w"], p["scale"], p["bias"])
    return out[:m, :n]


def _sepconv_kernel(x_ref, dw_ref, pw_ref, s_ref, b_ref, o_ref):
    # x_ref: [9, TM, Cp] bf16 tap-major patches; dw_ref: [9, 1, Cp] f32;
    # pw_ref: [Cp, Np] bf16; s/b: [1, Np] f32.
    # Depthwise = 9 unrolled VPU MACs on lane-dense [TM, Cp] slabs (f32 accum),
    # then the 1x1 pointwise matmul + BN + ReLU, all in one kernel.
    acc = x_ref[0] * dw_ref[0]
    for t in range(1, 9):
        acc = acc + x_ref[t] * dw_ref[t]
    y = jnp.dot(acc.astype(jnp.bfloat16), pw_ref[...],
                preferred_element_type=jnp.float32)
    y = y * s_ref[...] + b_ref[...]
    y = jnp.maximum(y, 0.0)                      # nn.ReLU
    o_ref[...] = y.astype(o_ref.dtype)


def sepconv_fused(x, p, dilation):
    """SeperableConv2DBNActiv: dilated 3x3 depthwise + 1x1 conv + BN + ReLU."""
    b, h, w, c = x.shape
    patches, ho, wo = im2col_tapmajor(x.astype(jnp.bfloat16), 3, 1,
                                      dilation, dilation)      # [9, M, C]
    m = b * ho * wo
    cp, np_ = p["pw_w"].shape
    tm = _choose_tm(m)
    mp = _round_up(m, tm)
    if mp != m or cp != c:
        patches = jnp.pad(patches, ((0, 0), (0, mp - m), (0, cp - c)))

    out = pl.pallas_call(
        _sepconv_kernel,
        out_shape=jax.ShapeDtypeStruct((mp, np_), jnp.bfloat16),
        grid_spec=pltpu.PrefetchScalarGridSpec(
            num_scalar_prefetch=0,
            grid=(mp // tm,),
            in_specs=[
                pl.BlockSpec((9, tm, cp), lambda i: (0, i, 0)),
                pl.BlockSpec((9, 1, cp), lambda i: (0, 0, 0)),
                pl.BlockSpec((cp, np_), lambda i: (0, 0)),
                pl.BlockSpec((1, np_), lambda i: (0, 0)),
                pl.BlockSpec((1, np_), lambda i: (0, 0)),
            ],
            out_specs=pl.BlockSpec((tm, np_), lambda i: (i, 0)),
        ),
        compiler_params=pltpu.CompilerParams(
            dimension_semantics=("parallel",),
            vmem_limit_bytes=VMEM_BUDGET),
    )(patches, p["dw_w"], p["pw_w"], p["pw_scale"], p["pw_bias"])
    return out[:m, :p["n"]].reshape(b, ho, wo, p["n"])


def _mul_kernel(a_ref, b_ref, o_ref):
    o_ref[...] = a_ref[...] * b_ref[...]


def elementwise_mul(a, b):
    """Lane-dense tiled a*b: flatten to (rows, 128) so stores are unmasked."""
    shape = a.shape
    n = a.size
    rows = -(-n // LANE)
    tm = min(512, _round_up(rows, 8))
    rows_p = _round_up(rows, tm)
    pad = rows_p * LANE - n
    a2 = jnp.pad(a.reshape(-1), (0, pad)).reshape(rows_p, LANE)
    b2 = jnp.pad(b.astype(a.dtype).reshape(-1), (0, pad)).reshape(rows_p, LANE)
    out = pl.pallas_call(
        _mul_kernel,
        out_shape=jax.ShapeDtypeStruct((rows_p, LANE), a.dtype),
        grid=(rows_p // tm,),
        in_specs=[pl.BlockSpec((tm, LANE), lambda i: (i, 0)),
                  pl.BlockSpec((tm, LANE), lambda i: (i, 0))],
        out_specs=pl.BlockSpec((tm, LANE), lambda i: (i, 0)),
        compiler_params=pltpu.CompilerParams(dimension_semantics=("parallel",)),
    )(a2, b2)
    return out.reshape(-1)[:n].reshape(shape)


# ----------------------------------------------------------------------------
# JAX glue: im2col, bilinear resize (align_corners=True), crop_center
# ----------------------------------------------------------------------------
def im2col_matrix(x, k, stride, pad, dilation):
    """x: NHWC -> [B*Ho*Wo, k*k*C] (tap-then-channel column order)."""
    b, h, w, c = x.shape
    xp = jnp.pad(x, ((0, 0), (pad, pad), (pad, pad), (0, 0)))
    ho = (h + 2 * pad - dilation * (k - 1) - 1) // stride + 1
    wo = (w + 2 * pad - dilation * (k - 1) - 1) // stride + 1
    cols = []
    for ki in range(k):
        for kj in range(k):
            sl = xp[:, ki * dilation: ki * dilation + (ho - 1) * stride + 1: stride,
                    kj * dilation: kj * dilation + (wo - 1) * stride + 1: stride, :]
            cols.append(sl)
    patches = jnp.stack(cols, axis=3)                 # [B, Ho, Wo, k*k, C]
    return patches.reshape(b * ho * wo, k * k * c), ho, wo


def im2col_tapmajor(x, k, stride, pad, dilation):
    """x: NHWC -> [k*k, B*Ho*Wo, C] (tap-major, for the fused separable conv)."""
    b, h, w, c = x.shape
    xp = jnp.pad(x, ((0, 0), (pad, pad), (pad, pad), (0, 0)))
    ho = (h + 2 * pad - dilation * (k - 1) - 1) // stride + 1
    wo = (w + 2 * pad - dilation * (k - 1) - 1) // stride + 1
    cols = []
    for ki in range(k):
        for kj in range(k):
            sl = xp[:, ki * dilation: ki * dilation + (ho - 1) * stride + 1: stride,
                    kj * dilation: kj * dilation + (wo - 1) * stride + 1: stride, :]
            cols.append(sl.reshape(b * ho * wo, c))
    return jnp.stack(cols, axis=0), ho, wo


def resize_bilinear_ac(x, out_h, out_w):
    """F.interpolate(..., mode='bilinear', align_corners=True) on NHWC."""
    dtype = x.dtype

    def lerp_axis(xx, axis, n_out):
        n_in = xx.shape[axis]
        if n_out == n_in:
            return xx
        scale = (n_in - 1) / max(n_out - 1, 1)
        c = jnp.arange(n_out, dtype=jnp.float32) * scale
        lo = jnp.floor(c).astype(jnp.int32)
        hi = jnp.minimum(lo + 1, n_in - 1)
        f = c - lo.astype(jnp.float32)
        xlo = jnp.take(xx, lo, axis=axis).astype(jnp.float32)
        xhi = jnp.take(xx, hi, axis=axis).astype(jnp.float32)
        shp = [1] * xx.ndim
        shp[axis] = n_out
        f = f.reshape(shp)
        return xlo * (1.0 - f) + xhi * f

    x = lerp_axis(x, 1, out_h)
    x = lerp_axis(x, 2, out_w)
    return x.astype(dtype)


def crop_center(h1, h2):
    """spec_utils.crop_center: center-crop h1's time axis (NHWC axis 2) to h2."""
    t1, t2 = h1.shape[2], h2.shape[2]
    if t1 == t2:
        return h1
    s = (t1 - t2) // 2
    return h1[:, :, s:s + t2, :]


# ----------------------------------------------------------------------------
# Layer forward functions (all conv math goes through the Pallas kernels)
# ----------------------------------------------------------------------------
def conv_bn_act(x, p, stride, pad, dilation, act, out_dtype=jnp.bfloat16):
    k = p["k"]
    b = x.shape[0]
    xb = x.astype(jnp.bfloat16)
    if k == 1 and stride == 1 and pad == 0:
        _, h, w, c = xb.shape
        xm, ho, wo = xb.reshape(b * h * w, c), h, w      # 1x1: no im2col needed
    else:
        xm, ho, wo = im2col_matrix(xb, k, stride, pad, dilation)
    y = matmul_fused(xm, p, act, out_dtype)
    return y.reshape(b, ho, wo, p["n"])


def encoder_fwd(p, x):
    skip = conv_bn_act(x, p["conv1"], 1, 1, 1, "lrelu")
    h = conv_bn_act(skip, p["conv2"], 2, 1, 1, "lrelu")
    return h, skip


def decoder_fwd(p, x, skip):
    b, h, w, c = x.shape
    x = resize_bilinear_ac(x, 2 * h, 2 * w)
    skip = crop_center(skip, x)
    x = jnp.concatenate([x, skip.astype(x.dtype)], axis=3)
    return conv_bn_act(x, p["conv"], 1, 1, 1, "relu")


def aspp_fwd(p, x, dilations=(4, 8, 16)):
    b, h, w, c = x.shape
    pooled = jnp.mean(x.astype(jnp.float32), axis=1, keepdims=True)  # AdaptiveAvgPool2d((1, None))
    feat1 = conv_bn_act(pooled, p["conv1"], 1, 0, 1, "relu")
    feat1 = resize_bilinear_ac(feat1, h, w)
    feat2 = conv_bn_act(x, p["conv2"], 1, 0, 1, "relu")
    feat3 = sepconv_fused(x, p["conv3"], dilations[0])
    feat4 = sepconv_fused(x, p["conv4"], dilations[1])
    feat5 = sepconv_fused(x, p["conv5"], dilations[2])
    out = jnp.concatenate([feat1, feat2, feat3, feat4, feat5], axis=3)
    out = conv_bn_act(out, p["bottleneck"], 1, 0, 1, "relu")
    # Dropout2d(0.1) -> identity in eval mode.
    return out


def base_asppnet_fwd(p, x):
    h, e1 = encoder_fwd(p["enc1"], x)
    h, e2 = encoder_fwd(p["enc2"], h)
    h, e3 = encoder_fwd(p["enc3"], h)
    h, e4 = encoder_fwd(p["enc4"], h)
    h = aspp_fwd(p["aspp"], h)
    h = decoder_fwd(p["dec4"], h, e4)
    h = decoder_fwd(p["dec3"], h, e3)
    h = decoder_fwd(p["dec2"], h, e2)
    h = decoder_fwd(p["dec1"], h, e1)
    return h


def cascaded_forward(params, x_nchw, n_fft):
    max_bin = n_fft // 2
    output_bin = n_fft // 2 + 1

    mix = x_nchw                                  # mix = x.detach()
    x = x_nchw[:, :, :max_bin]                    # x[:, :, :max_bin]
    x = jnp.transpose(x, (0, 2, 3, 1)).astype(jnp.bfloat16)   # NHWC [B, F, T, C]
    bandw = x.shape[1] // 2

    lo = base_asppnet_fwd(params["stg1_low"], x[:, :bandw])
    hi = base_asppnet_fwd(params["stg1_high"], x[:, bandw:])
    aux1 = jnp.concatenate([lo, hi], axis=1)      # cat along frequency (torch dim 2)

    h = jnp.concatenate([x, aux1], axis=3)        # cat along channels (torch dim 1)
    h = conv_bn_act(h, params["stg2_bridge"], 1, 0, 1, "relu")
    aux2 = base_asppnet_fwd(params["stg2_full"], h)

    h = jnp.concatenate([x, aux1, aux2], axis=3)
    h = conv_bn_act(h, params["stg3_bridge"], 1, 0, 1, "relu")
    h = base_asppnet_fwd(params["stg3_full"], h)

    mask = conv_bn_act(h, params["out"], 1, 0, 1, "sigmoid",
                       out_dtype=jnp.float32)     # sigmoid(out(h))

    diff = output_bin - mask.shape[1]
    mask = jnp.pad(mask, ((0, 0), (0, diff), (0, 0), (0, 0)), mode="edge")
    mask = jnp.transpose(mask, (0, 3, 1, 2))      # back to NCHW
    return elementwise_mul(mask, mix)             # mask * mix


# ----------------------------------------------------------------------------
# Deterministic synthetic parameters (pre-padded / pre-cast to tile shapes)
# ----------------------------------------------------------------------------
class KeyGen:
    def __init__(self, key):
        self.key = key

    def __call__(self):
        self.key, sub = jax.random.split(self.key)
        return sub


def _fold_bn(kg, cout):
    gamma = 1.0 + 0.02 * jax.random.normal(kg(), (cout,), jnp.float32)
    beta = 0.02 * jax.random.normal(kg(), (cout,), jnp.float32)
    mean = 0.02 * jax.random.normal(kg(), (cout,), jnp.float32)
    var = jnp.ones((cout,), jnp.float32)
    eps = 1e-5
    scale = gamma / jnp.sqrt(var + eps)
    bias = beta - mean * scale
    return scale, bias


def _pack_conv(w, scale, bias, cin, cout, k):
    """OIHW weight + folded BN -> tile-aligned bf16 matmul weight params."""
    kdim = k * k * cin
    kp, tk = _k_tiling(kdim)
    np_ = _round_up(cout, LANE)
    wmat = jnp.transpose(w, (2, 3, 1, 0)).reshape(kdim, cout)
    wpad = jnp.pad(wmat, ((0, kp - kdim), (0, np_ - cout))).astype(jnp.bfloat16)
    spad = jnp.pad(scale.reshape(1, -1), ((0, 0), (0, np_ - cout)))
    bpad = jnp.pad(bias.reshape(1, -1), ((0, 0), (0, np_ - cout)))
    return {"w": wpad, "scale": spad, "bias": bpad, "k": k, "n": cout, "tk": tk}


def make_conv_bn(kg, cin, cout, k):
    w = jax.random.normal(kg(), (cout, cin, k, k), jnp.float32) * math.sqrt(2.0 / (cin * k * k))
    scale, bias = _fold_bn(kg, cout)
    return _pack_conv(w, scale, bias, cin, cout, k)


def make_plain_conv(kg, cin, cout, k):
    w = jax.random.normal(kg(), (cout, cin, k, k), jnp.float32) * math.sqrt(2.0 / (cin * k * k))
    return _pack_conv(w, jnp.ones((cout,), jnp.float32),
                      jnp.zeros((cout,), jnp.float32), cin, cout, k)


def make_sep_conv(kg, cin, cout):
    dw = jax.random.normal(kg(), (cin, 1, 3, 3), jnp.float32) * math.sqrt(2.0 / 9.0)
    dw_t = jnp.transpose(dw, (2, 3, 1, 0)).reshape(9, 1, cin)     # tap-major, f32
    cp = _round_up(cin, LANE)
    dw_pad = jnp.pad(dw_t, ((0, 0), (0, 0), (0, cp - cin)))
    pw = make_conv_bn(kg, cin, cout, 1)
    return {"dw_w": dw_pad, "pw_w": pw["w"], "pw_scale": pw["scale"],
            "pw_bias": pw["bias"], "n": cout}


def make_encoder(kg, nin, nout):
    return {"conv1": make_conv_bn(kg, nin, nout, 3),
            "conv2": make_conv_bn(kg, nout, nout, 3)}


def make_aspp(kg, nin, nout):
    return {"conv1": make_conv_bn(kg, nin, nin, 1),
            "conv2": make_conv_bn(kg, nin, nin, 1),
            "conv3": make_sep_conv(kg, nin, nin),
            "conv4": make_sep_conv(kg, nin, nin),
            "conv5": make_sep_conv(kg, nin, nin),
            "bottleneck": make_conv_bn(kg, nin * 5, nout, 1)}


def make_base_asppnet(kg, nin, ch):
    return {"enc1": make_encoder(kg, nin, ch),
            "enc2": make_encoder(kg, ch, ch * 2),
            "enc3": make_encoder(kg, ch * 2, ch * 4),
            "enc4": make_encoder(kg, ch * 4, ch * 8),
            "aspp": make_aspp(kg, ch * 8, ch * 16),
            "dec4": {"conv": make_conv_bn(kg, ch * 24, ch * 8, 3)},
            "dec3": {"conv": make_conv_bn(kg, ch * 12, ch * 4, 3)},
            "dec2": {"conv": make_conv_bn(kg, ch * 6, ch * 2, 3)},
            "dec1": {"conv": make_conv_bn(kg, ch * 3, ch, 3)}}


def make_cascaded_params(key):
    kg = KeyGen(key)
    return {"stg1_low": make_base_asppnet(kg, 2, 32),
            "stg1_high": make_base_asppnet(kg, 2, 32),
            "stg2_bridge": make_conv_bn(kg, 34, 16, 1),
            "stg2_full": make_base_asppnet(kg, 16, 32),
            "stg3_bridge": make_conv_bn(kg, 66, 32, 1),
            "stg3_full": make_base_asppnet(kg, 32, 64),
            "out": make_plain_conv(kg, 64, 2, 1)}


# ----------------------------------------------------------------------------
# Main
# ----------------------------------------------------------------------------
if __name__ == "__main__":
    root = jax.random.PRNGKey(0)
    k_params, k_input = jax.random.split(root)

    n_fft = 64                      # -> max_bin=32, output_bin=33
    B, T = 1, 16                    # small time axis, divisible by 16
    params = make_cascaded_params(k_params)

    # Input magnitude spectrogram, NCHW: [B, 2, n_fft//2+1, T]
    x = jax.random.uniform(k_input, (B, 2, n_fft // 2 + 1, T), jnp.float32)

    out = cascaded_forward(params, x, n_fft)
    out = jax.block_until_ready(out)

    assert out.shape == (B, 2, n_fft // 2 + 1, T), out.shape
    assert bool(jnp.all(jnp.isfinite(out)))
    print("KERNEL_OK")
</pallas_src>

<mosaic_0001>
module attributes {stable_mosaic.version = 11 : i64} {
  func.func @_mm_kernel_singlek(%arg0: i32, %arg1: i32, %arg2: memref<256x128xbf16, #tpu.memory_space<vmem>>, %arg3: memref<128x128xbf16, #tpu.memory_space<vmem>>, %arg4: memref<1x128xf32, #tpu.memory_space<vmem>>, %arg5: memref<1x128xf32, #tpu.memory_space<vmem>>, %arg6: memref<256x128xbf16, #tpu.memory_space<vmem>>) attributes {dimension_semantics = [#tpu.dimension_semantics<parallel>, #tpu.dimension_semantics<parallel>], iteration_bounds = array<i64: 1, 1>, scalar_prefetch = 0 : i64, scratch_operands = 0 : i64, tpu.core_type = #tpu.core_type<tc>, window_params = [{transform_indices = @transform_0, window_bounds = array<i64: 256, 128>}, {transform_indices = @transform_1, window_bounds = array<i64: 128, 128>}, {transform_indices = @transform_2, window_bounds = array<i64: 1, 128>}, {transform_indices = @transform_3, window_bounds = array<i64: 1, 128>}, {transform_indices = @transform_4, window_bounds = array<i64: 256, 128>}]} {
    %c0 = arith.constant 0 : index
    %c0_0 = arith.constant 0 : index
    %0 = vector.load %arg2[%c0, %c0_0] : memref<256x128xbf16, #tpu.memory_space<vmem>>, vector<256x128xbf16>
    %c0_1 = arith.constant 0 : index
    %c0_2 = arith.constant 0 : index
    %1 = vector.load %arg3[%c0_1, %c0_2] : memref<128x128xbf16, #tpu.memory_space<vmem>>, vector<128x128xbf16>
    %cst = arith.constant dense<0.000000e+00> : vector<256x128xf32>
    %2 = tpu.matmul %0, %1, %cst {dimension_numbers = #tpu.dot_dimension_numbers<[1], [0], [0], [1], [0, 0, 1, 1], [], []>} : vector<256x128xbf16>, vector<128x128xbf16>, vector<256x128xf32> -> vector<256x128xf32>
    %c0_3 = arith.constant 0 : index
    %c0_4 = arith.constant 0 : index
    %3 = vector.load %arg4[%c0_3, %c0_4] : memref<1x128xf32, #tpu.memory_space<vmem>>, vector<1x128xf32>
    %c0_5 = arith.constant 0 : index
    %c0_6 = arith.constant 0 : index
    %4 = vector.load %arg5[%c0_5, %c0_6] : memref<1x128xf32, #tpu.memory_space<vmem>>, vector<1x128xf32>
    %5 = vector.broadcast %3 : vector<1x128xf32> to vector<256x128xf32>
    %6 = arith.mulf %2, %5 : vector<256x128xf32>
    %7 = vector.broadcast %4 : vector<1x128xf32> to vector<256x128xf32>
    %8 = arith.addf %6, %7 : vector<256x128xf32>
    %cst_7 = arith.constant 0.000000e+00 : f32
    %9 = vector.broadcast %cst_7 : f32 to vector<256x128xf32>
    %10 = arith.cmpf oge, %8, %9 : vector<256x128xf32>
    %cst_8 = arith.constant 0.00999999977 : f32
    %11 = vector.broadcast %cst_8 : f32 to vector<256x128xf32>
    %12 = arith.mulf %11, %8 : vector<256x128xf32>
    %13 = arith.select %10, %8, %12 : vector<256x128xi1>, vector<256x128xf32>
    %14 = arith.truncf %13 : vector<256x128xf32> to vector<256x128xbf16>
    %c0_9 = arith.constant 0 : index
    %c0_10 = arith.constant 0 : index
    %15 = vector.load %arg6[%c0_9, %c0_10] : memref<256x128xbf16, #tpu.memory_space<vmem>>, vector<256x128xbf16>
    tpu.vector_store %arg6[%c0_9, %c0_10], %14 {strides = array<i32>} : memref<256x128xbf16, #tpu.memory_space<vmem>>, vector<256x128xbf16>,
    return
  }
  func.func @transform_0(%arg0: i32, %arg1: i32) -> (i32, i32) {
    %c0_i32 = arith.constant 0 : i32
    %c0_i32_0 = arith.constant 0 : i32
    return %arg0, %c0_i32 : i32, i32
  }
  func.func @transform_1(%arg0: i32, %arg1: i32) -> (i32, i32) {
    %c0_i32 = arith.constant 0 : i32
    %c0_i32_0 = arith.constant 0 : i32
    return %c0_i32, %arg1 : i32, i32
  }
  func.func @transform_2(%arg0: i32, %arg1: i32) -> (i32, i32) {
    %c0_i32 = arith.constant 0 : i32
    %c0_i32_0 = arith.constant 0 : i32
    return %c0_i32, %arg1 : i32, i32
  }
  func.func @transform_3(%arg0: i32, %arg1: i32) -> (i32, i32) {
    %c0_i32 = arith.constant 0 : i32
    %c0_i32_0 = arith.constant 0 : i32
    return %c0_i32, %arg1 : i32, i32
  }
  func.func @transform_4(%arg0: i32, %arg1: i32) -> (i32, i32) {
    %c0_i32 = arith.constant 0 : i32
    return %arg0, %arg1 : i32, i32
  }
}

</mosaic_0001>

<bundles_post_ra>
// kernel: tpu_custom_call.1
= control target key start
LH: loop header
LB: loop body
LE: loop exit
PB: predicated region body
PF: predicated region fallthrough
CT: control target
= control target key end

     0   :  { %9 = vsyncpa [#allocation3], 0  ;;  %s1278_s0 = inlined_call_operand.hbm [shape: bf16[256,128], index: 0, kind: input, shape index: {}]   ;;  %s1279_s1 = inlined_call_operand.hbm [shape: bf16[128,128], index: 1, kind: input, shape index: {}]   ;;  %s1280_s2 = inlined_call_operand.vmem [shape: f32[1,128], index: 2, kind: input, shape index: {}]   ;;  %s1281_s3 = inlined_call_operand.vmem [shape: f32[1,128], index: 3, kind: input, shape index: {}]   ;;  %s1282_s4 = inlined_call_operand.hbm [shape: bf16[256,128], index: 4, kind: output, shape index: {}]  }
   0x1   :  { %10 = vsyncpa [#allocation6], 0 }
   0x2   :  { %11 = vsyncpa [#allocation4], 0  ;;  %s1126_s15 = smov [#allocation2]   ;;  %s1054_s19 = scalar_lea.hbm %s1278_s0, 2048 }
   0x3   :  { %s17_s16 = sshll.u32 %s1126_s15, 4  ;;  %p1055_p0 = scmp.ne.s32.totalorder %s1278_s0, %s1054_s19  ;;  %s18_s16 = int_to_ptr.vmem [resolvable:$true] %s17_s16 }
   0x4   :  { %p1058_p1 = scmp.lt.u32.totalorder %s1054_s19, %s1278_s0 }
   0x6   :  { %p1060_p2 = pnand %p1058_p1, %p1055_p0 }
   0x8   :  { %1063 = shalt.err (!%p1060_p2)
}
   0x9   :  { %s1064_s24 = scalar_lea.vmem %s18_s16, 2048  ;;  %p1069_p4 = scmp.lt.s32.totalorder %s18_s16, %s18_s16 }
   0xa   :  { %p1065_p3 = scmp.ne.s32.totalorder %s18_s16, %s1064_s24  ;;  %p1070_p5 = scmp.lt.s32.totalorder %s1064_s24, %s1064_s24 }
   0xc   :  { %p1071_p6 = por %p1070_p5, %p1069_p4 }
   0xe   :  { %p1072_p7 = pnand %p1071_p6, %p1065_p3 }
  0x10   :  { %1075 = shalt.err (!%p1072_p7)
}
  0x11   :  { %s1127_s25 = smov 64   ;;  %s1128_s26 = smov 4  }
  0x12   :  { %23 = dma.hbm_to_vmem [thread:$0]  %s1278_s0, 2048, %s18_s16, [#allocation3], %s1127_s25, %s1127_s25, %s1128_s26  }
  0x13   :  { %s1129_s29 = smov [#allocation5]   ;;  %s1076_s7 = scalar_lea.hbm %s1279_s1, 1024 }
  0x14   :  { %s29_s30 = sshll.u32 %s1129_s29, 4  ;;  %p1077_p8 = scmp.ne.s32.totalorder %s1279_s1, %s1076_s7  ;;  %s30_s30 = int_to_ptr.vmem [resolvable:$true] %s29_s30 }
  0x15   :  { %p1080_p9 = scmp.lt.u32.totalorder %s1076_s7, %s1279_s1 }
  0x17   :  { %p1082_p10 = pnand %p1080_p9, %p1077_p8 }
  0x19   :  { %1085 = shalt.err (!%p1082_p10)
}
  0x1a   :  { %s1086_s12 = scalar_lea.vmem %s30_s30, 1024  ;;  %p1091_p12 = scmp.lt.s32.totalorder %s30_s30, %s30_s30 }
  0x1b   :  { %p1087_p11 = scmp.ne.s32.totalorder %s30_s30, %s1086_s12  ;;  %p1092_p13 = scmp.lt.s32.totalorder %s1086_s12, %s1086_s12 }
  0x1d   :  { %p1093_p0 = por %p1092_p13, %p1091_p12 }
  0x1f   :  { %p1094_p1 = pnand %p1093_p0, %p1087_p11 }
  0x21   :  { %1097 = shalt.err (!%p1094_p1)
}
  0x22   :  { %35 = dma.hbm_to_vmem [thread:$0]  %s1279_s1, 1024, %s30_s30, [#allocation6], %s1127_s25, %s1127_s25, %s1128_s26  }
  0x23   :  { %1120 = dma.done.wait [#allocation3], 2048  }
  0x24   :  { %1121 = vsyncadd [#allocation3], 4294965248 }
  0x25   :  { %1122 = dma.done.wait [#allocation6], 1024  }
  0x26   :  { %1123 = vsyncadd [#allocation6], 4294966272  ;;  %v1030_v0 = vld [vmem:[#allocation5] sm:$0xff]   ;;  %v1031_v1 = vld [vmem:[#allocation5 + $0x8] sm:$0xff]  }
  0x27   :  { %961 = vmatprep.subr.bf16.mxu0 %v1030_v0  ;;  %1009 = vmatprep.subr.bf16.mxu1 %v1030_v0  ;;  %v1032_v2 = vld [vmem:[#allocation5 + $0x10] sm:$0xff]   ;;  %v1033_v3 = vld [vmem:[#allocation5 + $0x18] sm:$0xff]   ;;  %v1038_v4 = vld [vmem:[#allocation2] sm:$0xff]  }
  0x28   :  { %962 = vmatpush3.bf16.msra.mxu0 %v1030_v0  ;;  %1017 = vmatpush3.bf16.msra.mxu1 %v1030_v0  ;;  %v1039_v5 = vld [vmem:[#allocation2 + $0x40] sm:$0xff]   ;;  %v1035_v7 = vld [vmem:[#allocation5 + $0x28] sm:$0xff]   ;;  %v1036_v8 = vld [vmem:[#allocation5 + $0x30] sm:$0xff]  }
  0x29   :  { %963 = vmatprep.subr.bf16.mxu0 %v1031_v1  ;;  %1010 = vmatprep.subr.bf16.mxu1 %v1031_v1  ;;  %v1034_v6 = vld [vmem:[#allocation5 + $0x20] sm:$0xff]   ;;  %v1037_v9 = vld [vmem:[#allocation5 + $0x38] sm:$0xff]   ;;  %v1040_v10 = vld [vmem:[#allocation2 + $0x8] sm:$0xff]  }
  0x2a   :  { %977 = vmatprep.mubr.bf16.mxu0 %v1038_v4  ;;  %993 = vmatprep.mubr.bf16.mxu1 %v1039_v5  ;;  %v1041_v11 = vld [vmem:[#allocation2 + $0x48] sm:$0xff]   ;;  %v1042_v12 = vld [vmem:[#allocation2 + $0x10] sm:$0xff]   ;;  %v1044_v14 = vld [vmem:[#allocation2 + $0x18] sm:$0xff]  }
  0x2b   :  { %v1043_v13 = vld [vmem:[#allocation2 + $0x50] sm:$0xff]   ;;  %v1045_v15 = vld [vmem:[#allocation2 + $0x58] sm:$0xff]   ;;  %v1046_v16 = vld [vmem:[#allocation2 + $0x20] sm:$0xff]  }
  0x2c   :  { %964 = vmatpush3.bf16.msra.mxu0 %v1031_v1  ;;  %1018 = vmatpush3.bf16.msra.mxu1 %v1031_v1  ;;  %v1047_v17 = vld [vmem:[#allocation2 + $0x60] sm:$0xff]   ;;  %v1048_v18 = vld [vmem:[#allocation2 + $0x28] sm:$0xff]   ;;  %v1050_v20 = vld [vmem:[#allocation2 + $0x30] sm:$0xff]  }
  0x2d   :  { %965 = vmatprep.subr.bf16.mxu0 %v1032_v2  ;;  %1011 = vmatprep.subr.bf16.mxu1 %v1032_v2  ;;  %v1049_v19 = vld [vmem:[#allocation2 + $0x68] sm:$0xff]   ;;  %v1051_v21 = vld [vmem:[#allocation2 + $0x70] sm:$0xff]   ;;  %v1052_v22 = vld [vmem:[#allocation2 + $0x38] sm:$0xff]  }
  0x2e   :  { %v1053_v23 = vld [vmem:[#allocation2 + $0x78] sm:$0xff]   ;;  %v1189_v24 = vld [vmem:[%s1280_s2] ss:$0 sm:$0xff]  ;;  %s1130_s2 = smov [#allocation7]  }
  0x2f   :  { %v1194_v26 = vld [vmem:[%s1281_s3] ss:$0 sm:$0xff]  ;;  %s739_s3 = sshll.u32 %s1130_s2, 4  ;;  %s740_s3 = int_to_ptr.vmem [resolvable:$true] %s739_s3 }
  0x30   :  { %966 = vmatpush3.bf16.msra.mxu0 %v1032_v2  ;;  %1019 = vmatpush3.bf16.msra.mxu1 %v1032_v2  ;;  %s1098_s17 = scalar_lea.vmem %s740_s3, 2048  ;;  %p1103_p3 = scmp.lt.s32.totalorder %s740_s3, %s740_s3 }
  0x31   :  { %967 = vmatprep.subr.bf16.mxu0 %v1033_v3  ;;  %1012 = vmatprep.subr.bf16.mxu1 %v1033_v3  ;;  %p1099_p2 = scmp.ne.s32.totalorder %s740_s3, %s1098_s17  ;;  %p1104_p4 = scmp.lt.s32.totalorder %s1098_s17, %s1098_s17 }
  0x33   :  { %p1105_p5 = por %p1104_p4, %p1103_p3 }
  0x34   :  { %968 = vmatpush3.bf16.msra.mxu0 %v1033_v3  ;;  %1020 = vmatpush3.bf16.msra.mxu1 %v1033_v3 }
  0x35   :  { %969 = vmatprep.subr.bf16.mxu0 %v1034_v6  ;;  %1013 = vmatprep.subr.bf16.mxu1 %v1034_v6  ;;  %p1106_p6 = pnand %p1105_p5, %p1099_p2 }
  0x38   :  { %970 = vmatpush3.bf16.msra.mxu0 %v1034_v6  ;;  %1021 = vmatpush3.bf16.msra.mxu1 %v1034_v6 }
  0x39   :  { %971 = vmatprep.subr.bf16.mxu0 %v1035_v7  ;;  %1014 = vmatprep.subr.bf16.mxu1 %v1035_v7 }
  0x3c   :  { %972 = vmatpush3.bf16.msra.mxu0 %v1035_v7  ;;  %1022 = vmatpush3.bf16.msra.mxu1 %v1035_v7 }
  0x3d   :  { %973 = vmatprep.subr.bf16.mxu0 %v1036_v8  ;;  %1015 = vmatprep.subr.bf16.mxu1 %v1036_v8 }
  0x40   :  { %974 = vmatpush3.bf16.msra.mxu0 %v1036_v8  ;;  %1023 = vmatpush3.bf16.msra.mxu1 %v1036_v8 }
  0x41   :  { %975 = vmatprep.subr.bf16.mxu0 %v1037_v9  ;;  %1016 = vmatprep.subr.bf16.mxu1 %v1037_v9 }
  0x44   :  { %976 = vmatpush3.bf16.msra.mxu0 %v1037_v9  ;;  %1024 = vmatpush3.bf16.msra.mxu1 %v1037_v9 }
  0x47   :  { %978 = vmatmul.mubr.bf16.vlgmr.msra.gmra.mrb[0].mxu0 %v1040_v10  ;;  %994 = vmatmul.mubr.bf16.vlgmr.msra.gmra.mrb[0].mxu1 %v1041_v11 }
  0x48   :  { %981 = vmatprep.mubr.bf16.mxu0 %v1042_v12  ;;  %997 = vmatprep.mubr.bf16.mxu1 %v1043_v13 }
  0x4f   :  { %982 = vmatmul.mubr.bf16.gmra.mrb[4].mxu0 %v1044_v14  ;;  %998 = vmatmul.mubr.bf16.gmra.mrb[4].mxu1 %v1045_v15 }
  0x50   :  { %985 = vmatprep.mubr.bf16.mxu0 %v1046_v16  ;;  %1001 = vmatprep.mubr.bf16.mxu1 %v1047_v17 }
  0x57   :  { %986 = vmatmul.mubr.bf16.gmra.mrb[8].mxu0 %v1048_v18  ;;  %1002 = vmatmul.mubr.bf16.gmra.mrb[8].mxu1 %v1049_v19 }
  0x58   :  { %989 = vmatprep.mubr.bf16.mxu0 %v1050_v20  ;;  %1005 = vmatprep.mubr.bf16.mxu1 %v1051_v21 }
  0x5f   :  { %990 = vmatmul.mubr.bf16.gmra.mrb[12].mxu0 %v1052_v22  ;;  %1006 = vmatmul.mubr.bf16.gmra.mrb[12].mxu1 %v1053_v23 }
 0x11a   :  { %v979_v25 = vpop.f32.mrb[0].mxu0  ;;  %v995_v27 = vpop.f32.mrb[0].mxu1 }
 0x11b   :  { %v410_v28 = vmul.f32 %v979_v25, %v1189_v24  ;;  %v426_v29 = vmul.f32 %v995_v27, %v1189_v24  ;;  %v273_v30 = vpop.f32.mrb[1].mxu0  ;;  %v337_v31 = vpop.f32.mrb[1].mxu1 }
 0x11c   :  { %v408_v32 = vmul.f32 %v1189_v24, %v273_v30  ;;  %v424_v33 = vmul.f32 %v1189_v24, %v337_v31  ;;  %v980_v34 = vpop.f32.mrb[2].mxu0  ;;  %v996_v35 = vpop.f32.mrb[2].mxu1 }
 0x11d   :  { %v448_v36 = vadd.f32 %v1194_v26, %v410_v28  ;;  %v464_v37 = vadd.f32 %v1194_v26, %v426_v29  ;;  %v411_v38 = vmul.f32 %v980_v34, %v1189_v24  ;;  %v427_v39 = vmul.f32 %v996_v35, %v1189_v24  ;;  %v276_v40 = vpop.f32.mrb[3].mxu0  ;;  %v340_v41 = vpop.f32.mrb[3].mxu1 }
 0x11e   :  { %v446_v42 = vadd.f32 %v1194_v26, %v408_v32  ;;  %v462_v43 = vadd.f32 %v1194_v26, %v424_v33  ;;  %v409_v44 = vmul.f32 %v1189_v24, %v276_v40  ;;  %v425_v45 = vmul.f32 %v1189_v24, %v340_v41 }
 0x11f   :  { %vm480_vm0 = vcmp.ge.f32.partialorder %v448_v36, 0.0  ;;  %v512_v46 = vmul.f32 0.01, %v448_v36  ;;  %vm496_vm1 = vcmp.ge.f32.partialorder %v464_v37, 0.0  ;;  %v528_v47 = vmul.f32 0.01, %v464_v37 }
 0x120   :  { %vm478_vm2 = vcmp.ge.f32.partialorder %v446_v42, 0.0  ;;  %v510_v48 = vmul.f32 0.01, %v446_v42  ;;  %vm494_vm3 = vcmp.ge.f32.partialorder %v462_v43, 0.0  ;;  %v526_v49 = vmul.f32 0.01, %v462_v43 }
 0x121   :  { %v544_v50 = vsel %vm480_vm0, %v448_v36, %v512_v46  ;;  %v560_v51 = vsel %vm496_vm1, %v464_v37, %v528_v47  ;;  %v449_v52 = vadd.f32 %v1194_v26, %v411_v38  ;;  %v465_v53 = vadd.f32 %v1194_v26, %v427_v39 }
 0x122   :  { %v542_v54 = vsel %vm478_vm2, %v446_v42, %v510_v48  ;;  %v558_v55 = vsel %vm494_vm3, %v462_v43, %v526_v49  ;;  %v447_v56 = vadd.f32 %v1194_v26, %v409_v44  ;;  %v463_v57 = vadd.f32 %v1194_v26, %v425_v45  ;;  %v983_v58 = vpop.f32.mrb[4].mxu0  ;;  %v999_v59 = vpop.f32.mrb[4].mxu1 }
 0x123   :  { %vm481_vm4 = vcmp.ge.f32.partialorder %v449_v52, 0.0  ;;  %v513_v60 = vmul.f32 0.01, %v449_v52  ;;  %vm497_vm5 = vcmp.ge.f32.partialorder %v465_v53, 0.0  ;;  %v529_v61 = vmul.f32 0.01, %v465_v53 }
 0x124   :  { %vm479_vm6 = vcmp.ge.f32.partialorder %v447_v56, 0.0  ;;  %v511_v62 = vmul.f32 0.01, %v447_v56  ;;  %vm495_vm7 = vcmp.ge.f32.partialorder %v463_v57, 0.0  ;;  %v527_v63 = vmul.f32 0.01, %v463_v57 }
 0x125   :  { %v545_v0 = vsel %vm481_vm4, %v449_v52, %v513_v60  ;;  %v561_v1 = vsel %vm497_vm5, %v465_v53, %v529_v61  ;;  %v414_v2 = vmul.f32 %v983_v58, %v1189_v24  ;;  %v430_v3 = vmul.f32 %v999_v59, %v1189_v24  ;;  %v289_v4 = vpop.f32.mrb[5].mxu0  ;;  %v353_v5 = vpop.f32.mrb[5].mxu1 }
 0x126   :  { %v850_v6 = vpack.c.bf16 %v545_v0, %v544_v50  ;;  %v890_v7 = vpack.c.bf16 %v561_v1, %v560_v51  ;;  %v543_v8 = vsel %vm479_vm6, %v447_v56, %v511_v62  ;;  %v559_v9 = vsel %vm495_vm7, %v463_v57, %v527_v63  ;;  %v984_v10 = vpop.f32.mrb[6].mxu0  ;;  %v1000_v11 = vpop.f32.mrb[6].mxu1 }
 0x127   :  { %v845_v12 = vpack.c.bf16 %v543_v8, %v542_v54  ;;  %v885_v13 = vpack.c.bf16 %v559_v9, %v558_v55  ;;  %v452_v14 = vadd.f32 %v1194_v26, %v414_v2  ;;  %v468_v15 = vadd.f32 %v1194_v26, %v430_v3  ;;  %v292_v16 = vpop.f32.mrb[7].mxu0  ;;  %v356_v17 = vpop.f32.mrb[7].mxu1 }
 0x128   :  { %922 = vst [vmem:[#allocation7 + $0x8] sm:$0xff] %v850_v6   ;;  %930 = vst [vmem:[#allocation7 + $0x48] sm:$0xff] %v890_v7   ;;  %v412_v18 = vmul.f32 %v1189_v24, %v289_v4  ;;  %v428_v19 = vmul.f32 %v1189_v24, %v353_v5  ;;  %v415_v20 = vmul.f32 %v984_v10, %v1189_v24 }
 0x129   :  { %v431_v21 = vmul.f32 %v1000_v11, %v1189_v24  ;;  %846 = vst [vmem:[#allocation7] sm:$0xff] %v845_v12   ;;  %929 = vst [vmem:[#allocation7 + $0x40] sm:$0xff] %v885_v13   ;;  %vm484_vm8 = vcmp.ge.f32.partialorder %v452_v14, 0.0  ;;  %v516_v22 = vmul.f32 0.01, %v452_v14  ;;  %vm500_vm9 = vcmp.ge.f32.partialorder %v468_v15, 0.0 }
 0x12a   :  { %v532_v23 = vmul.f32 0.01, %v468_v15  ;;  %v450_v25 = vadd.f32 %v1194_v26, %v412_v18  ;;  %v466_v27 = vadd.f32 %v1194_v26, %v428_v19  ;;  %v453_v28 = vadd.f32 %v1194_v26, %v415_v20  ;;  %v987_v30 = vpop.f32.mrb[8].mxu0  ;;  %v1003_v31 = vpop.f32.mrb[8].mxu1 }
 0x12b   :  { %v469_v29 = vadd.f32 %v1194_v26, %v431_v21  ;;  %v548_v32 = vsel %vm484_vm8, %v452_v14, %v516_v22  ;;  %v413_v34 = vmul.f32 %v1189_v24, %v292_v16  ;;  %v429_v35 = vmul.f32 %v1189_v24, %v356_v17  ;;  %v305_v36 = vpop.f32.mrb[9].mxu0  ;;  %v369_v37 = vpop.f32.mrb[9].mxu1 }
 0x12c   :  { %v564_v33 = vsel %vm500_vm9, %v468_v15, %v532_v23  ;;  %vm482_vm10 = vcmp.ge.f32.partialorder %v450_v25, 0.0  ;;  %v514_v38 = vmul.f32 0.01, %v450_v25  ;;  %vm498_vm11 = vcmp.ge.f32.partialorder %v466_v27, 0.0  ;;  %v988_v46 = vpop.f32.mrb[10].mxu0  ;;  %v1004_v47 = vpop.f32.mrb[10].mxu1 }
 0x12d   :  { %v530_v39 = vmul.f32 0.01, %v466_v27  ;;  %vm485_vm12 = vcmp.ge.f32.partialorder %v453_v28, 0.0  ;;  %v517_v40 = vmul.f32 0.01, %v453_v28  ;;  %vm501_vm13 = vcmp.ge.f32.partialorder %v469_v29, 0.0 }
 0x12e   :  { %v533_v41 = vmul.f32 0.01, %v469_v29  ;;  %v546_v42 = vsel %vm482_vm10, %v450_v25, %v514_v38  ;;  %v451_v44 = vadd.f32 %v1194_v26, %v413_v34  ;;  %v467_v45 = vadd.f32 %v1194_v26, %v429_v35  ;;  %v308_v52 = vpop.f32.mrb[11].mxu0  ;;  %v372_v53 = vpop.f32.mrb[11].mxu1 }
 0x12f   :  { %v562_v43 = vsel %vm498_vm11, %v466_v27, %v530_v39  ;;  %v549_v48 = vsel %vm485_vm12, %v453_v28, %v517_v40  ;;  %v418_v50 = vmul.f32 %v987_v30, %v1189_v24  ;;  %v434_v51 = vmul.f32 %v1003_v31, %v1189_v24 }
 0x130   :  { %v565_v49 = vsel %vm501_vm13, %v469_v29, %v533_v41  ;;  %v860_v54 = vpack.c.bf16 %v549_v48, %v548_v32  ;;  %vm483_vm14 = vcmp.ge.f32.partialorder %v451_v44, 0.0  ;;  %v515_v56 = vmul.f32 0.01, %v451_v44 }
 0x131   :  { %v900_v55 = vpack.c.bf16 %v565_v49, %v564_v33  ;;  %vm499_vm15 = vcmp.ge.f32.partialorder %v467_v45, 0.0  ;;  %v531_v57 = vmul.f32 0.01, %v467_v45  ;;  %v456_v58 = vadd.f32 %v1194_v26, %v418_v50 }
 0x132   :  { %v472_v59 = vadd.f32 %v1194_v26, %v434_v51  ;;  %924 = vst [vmem:[#allocation7 + $0x18] sm:$0xff] %v860_v54   ;;  %v547_v60 = vsel %vm483_vm14, %v451_v44, %v515_v56  ;;  %v416_v61 = vmul.f32 %v1189_v24, %v305_v36  ;;  %v432_v62 = vmul.f32 %v1189_v24, %v369_v37  ;;  %v991_v0 = vpop.f32.mrb[12].mxu0  ;;  %v1007_v1 = vpop.f32.mrb[12].mxu1 }
 0x133   :  { %932 = vst [vmem:[#allocation7 + $0x58] sm:$0xff] %v900_v55   ;;  %v419_v63 = vmul.f32 %v988_v46, %v1189_v24  ;;  %v855_v2 = vpack.c.bf16 %v547_v60, %v546_v42  ;;  %v563_v3 = vsel %vm499_vm15, %v467_v45, %v531_v57  ;;  %vm488_vm0 = vcmp.ge.f32.partialorder %v456_v58, 0.0  ;;  %v321_v5 = vpop.f32.mrb[13].mxu0  ;;  %v385_v6 = vpop.f32.mrb[13].mxu1 }
 0x134   :  { %v520_v4 = vmul.f32 0.01, %v456_v58  ;;  %v895_v7 = vpack.c.bf16 %v563_v3, %v562_v43  ;;  %vm504_vm1 = vcmp.ge.f32.partialorder %v472_v59, 0.0  ;;  %v536_v8 = vmul.f32 0.01, %v472_v59  ;;  %v992_v10 = vpop.f32.mrb[14].mxu0 }
 0x135   :  { %v454_v9 = vadd.f32 %v1194_v26, %v416_v61  ;;  %v1008_v11 = vpop.f32.mrb[14].mxu1  ;;  %923 = vst [vmem:[#allocation7 + $0x10] sm:$0xff] %v855_v2   ;;  %v470_v12 = vadd.f32 %v1194_v26, %v432_v62  ;;  %v457_v13 = vadd.f32 %v1194_v26, %v419_v63  ;;  %v435_v14 = vmul.f32 %v1004_v47, %v1189_v24  ;;  %v324_v15 = vpop.f32.mrb[15].mxu0 }
 0x136   :  { %v388_v16 = vpop.f32.mrb[15].mxu1  ;;  %931 = vst [vmem:[#allocation7 + $0x50] sm:$0xff] %v895_v7   ;;  %v552_v17 = vsel %vm488_vm0, %v456_v58, %v520_v4  ;;  %v568_v18 = vsel %vm504_vm1, %v472_v59, %v536_v8  ;;  %v417_v19 = vmul.f32 %v1189_v24, %v308_v52  ;;  %v433_v25 = vmul.f32 %v1189_v24, %v372_v53 }
 0x137   :  { %vm486_vm2 = vcmp.ge.f32.partialorder %v454_v9, 0.0  ;;  %v518_v20 = vmul.f32 0.01, %v454_v9  ;;  %vm489_vm3 = vcmp.ge.f32.partialorder %v457_v13, 0.0  ;;  %v521_v21 = vmul.f32 0.01, %v457_v13 }
 0x138   :  { %vm502_vm4 = vcmp.ge.f32.partialorder %v470_v12, 0.0  ;;  %v473_v22 = vadd.f32 %v1194_v26, %v435_v14  ;;  %v455_v23 = vadd.f32 %v1194_v26, %v417_v19  ;;  %v534_v27 = vmul.f32 0.01, %v470_v12 }
 0x139   :  { %v553_v28 = vsel %vm489_vm3, %v457_v13, %v521_v21  ;;  %v422_v29 = vmul.f32 %v991_v0, %v1189_v24  ;;  %v438_v30 = vmul.f32 %v1007_v1, %v1189_v24  ;;  %v550_v33 = vsel %vm486_vm2, %v454_v9, %v518_v20 }
 0x13a   :  { %v870_v31 = vpack.c.bf16 %v553_v28, %v552_v17  ;;  %vm505_vm5 = vcmp.ge.f32.partialorder %v473_v22, 0.0  ;;  %v537_v32 = vmul.f32 0.01, %v473_v22  ;;  %vm487_vm6 = vcmp.ge.f32.partialorder %v455_v23, 0.0 }
 0x13b   :  { %v519_v34 = vmul.f32 0.01, %v455_v23  ;;  %v471_v35 = vadd.f32 %v1194_v26, %v433_v25  ;;  %v460_v36 = vadd.f32 %v1194_v26, %v422_v29  ;;  %v476_v38 = vadd.f32 %v1194_v26, %v438_v30 }
 0x13c   :  { %926 = vst [vmem:[#allocation7 + $0x28] sm:$0xff] %v870_v31   ;;  %v569_v37 = vsel %vm505_vm5, %v473_v22, %v537_v32  ;;  %v420_v39 = vmul.f32 %v1189_v24, %v321_v5  ;;  %v423_v40 = vmul.f32 %v992_v10, %v1189_v24  ;;  %v436_v45 = vmul.f32 %v1189_v24, %v385_v6 }
 0x13d   :  { %v910_v41 = vpack.c.bf16 %v569_v37, %v568_v18  ;;  %v551_v42 = vsel %vm487_vm6, %v455_v23, %v519_v34  ;;  %vm503_vm7 = vcmp.ge.f32.partialorder %v471_v35, 0.0  ;;  %v535_v43 = vmul.f32 0.01, %v471_v35 }
 0x13e   :  { %v865_v44 = vpack.c.bf16 %v551_v42, %v550_v33  ;;  %v566_v46 = vsel %vm502_vm4, %v470_v12, %v534_v27  ;;  %vm492_vm8 = vcmp.ge.f32.partialorder %v460_v36, 0.0  ;;  %v524_v48 = vmul.f32 0.01, %v460_v36 }
 0x13f   :  { %934 = vst [vmem:[#allocation7 + $0x68] sm:$0xff] %v910_v41   ;;  %v567_v47 = vsel %vm503_vm7, %v471_v35, %v535_v43  ;;  %v540_v50 = vmul.f32 0.01, %v476_v38  ;;  %v461_v51 = vadd.f32 %v1194_v26, %v423_v40  ;;  %v439_v52 = vmul.f32 %v1008_v11, %v1189_v24 }
 0x140   :  { %925 = vst [vmem:[#allocation7 + $0x20] sm:$0xff] %v865_v44   ;;  %v905_v49 = vpack.c.bf16 %v567_v47, %v566_v46  ;;  %vm508_vm9 = vcmp.ge.f32.partialorder %v476_v38, 0.0  ;;  %v458_v53 = vadd.f32 %v1194_v26, %v420_v39  ;;  %v474_v54 = vadd.f32 %v1194_v26, %v436_v45 }
 0x141   :  { %vm493_vm10 = vcmp.ge.f32.partialorder %v461_v51, 0.0  ;;  %v525_v55 = vmul.f32 0.01, %v461_v51  ;;  %v477_v56 = vadd.f32 %v1194_v26, %v439_v52  ;;  %v556_v57 = vsel %vm492_vm8, %v460_v36, %v524_v48 }
 0x142   :  { %933 = vst [vmem:[#allocation7 + $0x60] sm:$0xff] %v905_v49   ;;  %v421_v58 = vmul.f32 %v1189_v24, %v324_v15  ;;  %v437_v59 = vmul.f32 %v1189_v24, %v388_v16  ;;  %v572_v60 = vsel %vm508_vm9, %v476_v38, %v540_v50  ;;  %v522_v63 = vmul.f32 0.01, %v458_v53 }
 0x143   :  { %v557_v61 = vsel %vm493_vm10, %v461_v51, %v525_v55  ;;  %vm509_vm11 = vcmp.ge.f32.partialorder %v477_v56, 0.0  ;;  %v541_v62 = vmul.f32 0.01, %v477_v56  ;;  %vm490_vm12 = vcmp.ge.f32.partialorder %v458_v53, 0.0 }
 0x144   :  { %v880_v0 = vpack.c.bf16 %v557_v61, %v556_v57  ;;  %v459_v1 = vadd.f32 %v1194_v26, %v421_v58  ;;  %v475_v2 = vadd.f32 %v1194_v26, %v437_v59  ;;  %vm506_vm13 = vcmp.ge.f32.partialorder %v474_v54, 0.0 }
 0x145   :  { %v538_v3 = vmul.f32 0.01, %v474_v54  ;;  %v573_v4 = vsel %vm509_vm11, %v477_v56, %v541_v62  ;;  %v554_v7 = vsel %vm490_vm12, %v458_v53, %v522_v63 }
 0x146   :  { %928 = vst [vmem:[#allocation7 + $0x38] sm:$0xff] %v880_v0   ;;  %v920_v5 = vpack.c.bf16 %v573_v4, %v572_v60  ;;  %vm491_vm14 = vcmp.ge.f32.partialorder %v459_v1, 0.0  ;;  %v523_v6 = vmul.f32 0.01, %v459_v1  ;;  %vm507_vm15 = vcmp.ge.f32.partialorder %v475_v2, 0.0 }
 0x147   :  { %v539_v24 = vmul.f32 0.01, %v475_v2  ;;  %v570_v9 = vsel %vm506_vm13, %v474_v54, %v538_v3 }
 0x148   :  { %936 = vst [vmem:[#allocation7 + $0x78] sm:$0xff] %v920_v5   ;;  %v555_v8 = vsel %vm491_vm14, %v459_v1, %v523_v6 }
 0x149   :  { %v875_v10 = vpack.c.bf16 %v555_v8, %v554_v7  ;;  %v571_v11 = vsel %vm507_vm15, %v475_v2, %v539_v24 }
 0x14a   :  { %v915_v12 = vpack.c.bf16 %v571_v11, %v570_v9 }
 0x14b   :  { %927 = vst [vmem:[#allocation7 + $0x30] sm:$0xff] %v875_v10  }
 0x14c   :  { %935 = vst [vmem:[#allocation7 + $0x70] sm:$0xff] %v915_v12  }
 0x14d   :  { %1109 = shalt.err (!%p1106_p6)
}
 0x14e   :  { %s1110_s20 = scalar_lea.hbm %s1282_s4, 2048 }
 0x14f   :  { %p1111_p7 = scmp.ne.s32.totalorder %s1282_s4, %s1110_s20  ;;  %p1114_p8 = scmp.lt.u32.totalorder %s1110_s20, %s1282_s4 }
 0x151   :  { %p1116_p9 = pnand %p1114_p8, %p1111_p7 }
 0x153   :  { %1119 = shalt.err (!%p1116_p9)
}
 0x154   :  { %745 = dma.vmem_to_hbm [thread:$0]  %s740_s3, 2048, %s1282_s4, [#allocation4], %s1127_s25, %s1127_s25, %s1128_s26  }
 0x155   :  { %1124 = dma.done.wait [#allocation4], 2048  }
 0x156   :  { %1125 = vsyncadd [#allocation4], 4294965248 }
 0x157   :  { %749 = vsyncpa [#allocation3], 1 }
 0x158   :  { %750 = vsyncpa [#allocation6], 1 }
 0x159   :  { %751 = vsyncpa [#allocation4], 1 }

</bundles_post_ra>
